<compile_context>
chip_gen: v5e
topology: v5e:2x2
jax: 0.10.0
libtpu: 0.0.40
codegen_flags: <defaults>
</compile_context>

<pallas_src>
import functools

import jax
import jax.numpy as jnp
from jax.experimental import pallas as pl
from jax.experimental.pallas import tpu as pltpu

LN_EPS = 1e-5
K_PAD = 8           # layer-1 contraction padded 7 -> 8
OUT_PAD = 128       # lane-dense padded output width (51 -> 128)
MATMUL_DTYPE = jnp.bfloat16


def _round_up(n, m):
    return ((n + m - 1) // m) * m


def _layernorm(h, gamma, beta):
    # One-pass stats: mean and mean-of-squares are independent reductions
    # (no reduce -> elementwise -> reduce dependency chain).
    mu = jnp.mean(h, axis=-1, keepdims=True)
    ms = jnp.mean(h * h, axis=-1, keepdims=True)
    var = jnp.maximum(ms - mu * mu, 0.0)
    return (h - mu) * jax.lax.rsqrt(var + LN_EPS) * gamma + beta


def ddqn_kernel(x_ref,
                w1_ref, b1_ref, g1_ref, be1_ref,
                w2_ref, b2_ref, g2_ref, be2_ref,
                w3_ref, b3_ref,
                w4_ref, b4_ref,
                out_ref):
    x = x_ref[...]

    # Layer 1: Linear(7->128, K padded to 8) + LayerNorm + ReLU (+Dropout=id)
    h = jnp.dot(x.astype(MATMUL_DTYPE), w1_ref[...],
                preferred_element_type=jnp.float32) + b1_ref[...]
    h = _layernorm(h, g1_ref[...], be1_ref[...])
    h = jnp.maximum(h, 0.0)

    # Layer 2: Linear(128->128) + LayerNorm + ReLU (+Dropout=id)
    h = jnp.dot(h.astype(MATMUL_DTYPE), w2_ref[...],
                preferred_element_type=jnp.float32) + b2_ref[...]
    h = _layernorm(h, g2_ref[...], be2_ref[...])
    h = jnp.maximum(h, 0.0)

    # Layer 3: Linear(128->64) + ReLU
    h = jnp.dot(h.astype(MATMUL_DTYPE), w3_ref[...],
                preferred_element_type=jnp.float32) + b3_ref[...]
    h = jnp.maximum(h, 0.0)

    # Layer 4: Linear(64->51) padded to a lane-dense 128-wide output block.
    q = jnp.dot(h.astype(MATMUL_DTYPE), w4_ref[...],
                preferred_element_type=jnp.float32) + b4_ref[...]
    out_ref[...] = q.astype(out_ref.dtype)


@functools.partial(jax.jit, static_argnames=("tile_b",))
def ddqn_forward(x, params, *, tile_b=1024):
    """x: (B, 7) float32.  params: tuple of 12 arrays (see init_params)."""
    (w1, b1, g1, be1, w2, b2, g2, be2, w3, b3, w4, b4) = params
    B, in_dim = x.shape
    num_actions = w4.shape[-1]

    # ---- layout prep (cheap, constant-folded / fused by XLA under jit) ----
    xp = jnp.pad(x.astype(jnp.float32), ((0, 0), (0, K_PAD - in_dim)))
    w1p = jnp.pad(w1, ((0, K_PAD - w1.shape[0]), (0, 0))).astype(MATMUL_DTYPE)
    w2p = w2.astype(MATMUL_DTYPE)
    w3p = w3.astype(MATMUL_DTYPE)
    w4p = jnp.pad(w4, ((0, 0), (0, OUT_PAD - num_actions))).astype(MATMUL_DTYPE)
    b4p = jnp.pad(b4, ((0, 0), (0, OUT_PAD - num_actions)))

    tile = min(tile_b, _round_up(B, 8))
    Bp = _round_up(B, tile)
    if Bp != B:
        xp = jnp.pad(xp, ((0, Bp - B), (0, 0)))
    grid = (Bp // tile,)

    def const(shape):
        # Weights / biases / LN params: same block every grid step -> resident.
        return pl.BlockSpec(shape, lambda i: (0, 0))

    in_specs = [
        pl.BlockSpec((tile, K_PAD), lambda i: (i, 0)),   # x tile
        const((K_PAD, 128)), const((1, 128)), const((1, 128)), const((1, 128)),
        const((128, 128)),  const((1, 128)), const((1, 128)), const((1, 128)),
        const((128, 64)),   const((1, 64)),
        const((64, OUT_PAD)), const((1, OUT_PAD)),
    ]
    out_specs = pl.BlockSpec((tile, OUT_PAD), lambda i: (i, 0))

    flops_per_row = 2 * (K_PAD * 128 + 128 * 128 + 128 * 64 + 64 * OUT_PAD)
    weight_bytes = sum(int(p.size) * p.dtype.itemsize
                       for p in (w1p, b1, g1, be1, w2p, b2, g2, be2,
                                 w3p, b3, w4p, b4p))
    cost = pl.CostEstimate(
        flops=int(Bp) * flops_per_row,
        transcendentals=2 * int(Bp),                       # rsqrt per LN row
        bytes_accessed=int(Bp) * (K_PAD + OUT_PAD) * 4 + weight_bytes,
    )

    out = pl.pallas_call(
        ddqn_kernel,
        out_shape=jax.ShapeDtypeStruct((Bp, OUT_PAD), jnp.float32),
        grid_spec=pltpu.PrefetchScalarGridSpec(
            num_scalar_prefetch=0,
            grid=grid,
            in_specs=in_specs,
            out_specs=out_specs,
        ),
        compiler_params=pltpu.CompilerParams(
            dimension_semantics=("parallel",),
            vmem_limit_bytes=32 * 1024 * 1024,
        ),
        cost_estimate=cost,
    )(xp, w1p, b1, g1, be1, w2p, b2, g2, be2, w3p, b3, w4p, b4p)

    return out[:B, :num_actions]


def init_params(key, input_dim=7, num_actions=51):
    """Deterministic PyTorch-nn.Linear-style init (uniform +-1/sqrt(fan_in))."""
    dims = [(input_dim, 128), (128, 128), (128, 64), (64, num_actions)]
    keys = jax.random.split(key, 2 * len(dims))
    ws, bs = [], []
    for i, (fan_in, fan_out) in enumerate(dims):
        bound = 1.0 / jnp.sqrt(jnp.float32(fan_in))
        w = jax.random.uniform(keys[2 * i], (fan_in, fan_out), jnp.float32,
                               -bound, bound)
        b = jax.random.uniform(keys[2 * i + 1], (1, fan_out), jnp.float32,
                               -bound, bound)
        ws.append(w)
        bs.append(b)
    # LayerNorm affine params: gamma=1, beta=0 (PyTorch default init).
    g1 = jnp.ones((1, 128), jnp.float32)
    be1 = jnp.zeros((1, 128), jnp.float32)
    g2 = jnp.ones((1, 128), jnp.float32)
    be2 = jnp.zeros((1, 128), jnp.float32)
    return (ws[0], bs[0], g1, be1,
            ws[1], bs[1], g2, be2,
            ws[2], bs[2],
            ws[3], bs[3])


def ddqn_reference(x, params):
    """Pure-JAX f32 reference of the same forward (eval mode)."""
    (w1, b1, g1, be1, w2, b2, g2, be2, w3, b3, w4, b4) = params

    def ln(h, g, b):
        mu = jnp.mean(h, axis=-1, keepdims=True)
        var = jnp.mean((h - mu) ** 2, axis=-1, keepdims=True)
        return (h - mu) * jax.lax.rsqrt(var + LN_EPS) * g + b

    h = jnp.maximum(ln(x @ w1 + b1, g1, be1), 0.0)
    h = jnp.maximum(ln(h @ w2 + b2, g2, be2), 0.0)
    h = jnp.maximum(h @ w3 + b3, 0.0)
    return h @ w4 + b4


if __name__ == "__main__":
    key = jax.random.PRNGKey(0)
    k_param, k_x = jax.random.split(key)

    B, INPUT_DIM, NUM_ACTIONS = 8, 7, 51
    params = init_params(k_param, INPUT_DIM, NUM_ACTIONS)
    x = jax.random.normal(k_x, (B, INPUT_DIM), jnp.float32)

    q = ddqn_forward(x, params)
    q = jax.block_until_ready(q)

    q_ref = ddqn_reference(x, params)
    assert q.shape == (B, NUM_ACTIONS), q.shape
    # bf16 matmul inputs with f32 accumulation -> relaxed (but tight-for-bf16)
    # tolerance against the pure-f32 reference.
    assert jnp.allclose(q, q_ref, atol=5e-2, rtol=5e-2), (
        float(jnp.max(jnp.abs(q - q_ref))))

    print("KERNEL_OK")
</pallas_src>

<mosaic_0001>
module attributes {stable_mosaic.version = 11 : i64} {
  func.func @ddqn_kernel(%arg0: i32, %arg1: memref<8x8xf32, #tpu.memory_space<vmem>>, %arg2: memref<8x128xbf16, #tpu.memory_space<vmem>>, %arg3: memref<1x128xf32, #tpu.memory_space<vmem>>, %arg4: memref<1x128xf32, #tpu.memory_space<vmem>>, %arg5: memref<1x128xf32, #tpu.memory_space<vmem>>, %arg6: memref<128x128xbf16, #tpu.memory_space<vmem>>, %arg7: memref<1x128xf32, #tpu.memory_space<vmem>>, %arg8: memref<1x128xf32, #tpu.memory_space<vmem>>, %arg9: memref<1x128xf32, #tpu.memory_space<vmem>>, %arg10: memref<128x64xbf16, #tpu.memory_space<vmem>>, %arg11: memref<1x64xf32, #tpu.memory_space<vmem>>, %arg12: memref<64x128xbf16, #tpu.memory_space<vmem>>, %arg13: memref<1x128xf32, #tpu.memory_space<vmem>>, %arg14: memref<8x128xf32, #tpu.memory_space<vmem>>) attributes {dimension_semantics = [#tpu.dimension_semantics<parallel>], iteration_bounds = array<i64: 1>, scalar_prefetch = 0 : i64, scratch_operands = 0 : i64, tpu.core_type = #tpu.core_type<tc>, window_params = [{transform_indices = @transform_0, window_bounds = array<i64: 8, 8>}, {pipeline_mode = #tpu.pipeline_mode<synchronous>, transform_indices = @transform_1, window_bounds = array<i64: 8, 128>}, {pipeline_mode = #tpu.pipeline_mode<synchronous>, transform_indices = @transform_2, window_bounds = array<i64: 1, 128>}, {pipeline_mode = #tpu.pipeline_mode<synchronous>, transform_indices = @transform_3, window_bounds = array<i64: 1, 128>}, {pipeline_mode = #tpu.pipeline_mode<synchronous>, transform_indices = @transform_4, window_bounds = array<i64: 1, 128>}, {pipeline_mode = #tpu.pipeline_mode<synchronous>, transform_indices = @transform_5, window_bounds = array<i64: 128, 128>}, {pipeline_mode = #tpu.pipeline_mode<synchronous>, transform_indices = @transform_6, window_bounds = array<i64: 1, 128>}, {pipeline_mode = #tpu.pipeline_mode<synchronous>, transform_indices = @transform_7, window_bounds = array<i64: 1, 128>}, {pipeline_mode = #tpu.pipeline_mode<synchronous>, transform_indices = @transform_8, window_bounds = array<i64: 1, 128>}, {pipeline_mode = #tpu.pipeline_mode<synchronous>, transform_indices = @transform_9, window_bounds = array<i64: 128, 64>}, {pipeline_mode = #tpu.pipeline_mode<synchronous>, transform_indices = @transform_10, window_bounds = array<i64: 1, 64>}, {pipeline_mode = #tpu.pipeline_mode<synchronous>, transform_indices = @transform_11, window_bounds = array<i64: 64, 128>}, {pipeline_mode = #tpu.pipeline_mode<synchronous>, transform_indices = @transform_12, window_bounds = array<i64: 1, 128>}, {transform_indices = @transform_13, window_bounds = array<i64: 8, 128>}]} {
    %c0 = arith.constant 0 : index
    %c0_0 = arith.constant 0 : index
    %0 = vector.load %arg1[%c0, %c0_0] : memref<8x8xf32, #tpu.memory_space<vmem>>, vector<8x8xf32>
    %1 = arith.truncf %0 : vector<8x8xf32> to vector<8x8xbf16>
    %c0_1 = arith.constant 0 : index
    %c0_2 = arith.constant 0 : index
    %2 = vector.load %arg2[%c0_1, %c0_2] : memref<8x128xbf16, #tpu.memory_space<vmem>>, vector<8x128xbf16>
    %cst = arith.constant dense<0.000000e+00> : vector<8x128xf32>
    %3 = tpu.matmul %1, %2, %cst {dimension_numbers = #tpu.dot_dimension_numbers<[1], [0], [0], [1], [0, 0, 1, 1], [], []>} : vector<8x8xbf16>, vector<8x128xbf16>, vector<8x128xf32> -> vector<8x128xf32>
    %c0_3 = arith.constant 0 : index
    %c0_4 = arith.constant 0 : index
    %4 = vector.load %arg3[%c0_3, %c0_4] : memref<1x128xf32, #tpu.memory_space<vmem>>, vector<1x128xf32>
    %5 = vector.broadcast %4 : vector<1x128xf32> to vector<8x128xf32>
    %6 = arith.addf %3, %5 : vector<8x128xf32>
    %c0_5 = arith.constant 0 : index
    %c0_6 = arith.constant 0 : index
    %7 = vector.load %arg4[%c0_5, %c0_6] : memref<1x128xf32, #tpu.memory_space<vmem>>, vector<1x128xf32>
    %c0_7 = arith.constant 0 : index
    %c0_8 = arith.constant 0 : index
    %8 = vector.load %arg5[%c0_7, %c0_8] : memref<1x128xf32, #tpu.memory_space<vmem>>, vector<1x128xf32>
    %cst_9 = arith.constant dense<0.000000e+00> : vector<8xf32>
    %9 = vector.multi_reduction <add>, %6, %cst_9 [1] : vector<8x128xf32> to vector<8xf32>
    %10 = vector.shape_cast %9 : vector<8xf32> to vector<8x1xf32>
    %cst_10 = arith.constant 1.280000e+02 : f32
    %11 = vector.broadcast %cst_10 : f32 to vector<8x1xf32>
    %12 = arith.divf %10, %11 : vector<8x1xf32>
    %13 = arith.mulf %6, %6 : vector<8x128xf32>
    %cst_11 = arith.constant dense<0.000000e+00> : vector<8xf32>
    %14 = vector.multi_reduction <add>, %13, %cst_11 [1] : vector<8x128xf32> to vector<8xf32>
    %15 = vector.shape_cast %14 : vector<8xf32> to vector<8x1xf32>
    %cst_12 = arith.constant 1.280000e+02 : f32
    %16 = vector.broadcast %cst_12 : f32 to vector<8x1xf32>
    %17 = arith.divf %15, %16 : vector<8x1xf32>
    %18 = arith.mulf %12, %12 : vector<8x1xf32>
    %19 = arith.subf %17, %18 : vector<8x1xf32>
    %cst_13 = arith.constant 0.000000e+00 : f32
    %20 = vector.broadcast %cst_13 : f32 to vector<8x1xf32>
    %21 = arith.maximumf %19, %20 : vector<8x1xf32>
    %22 = vector.broadcast %12 : vector<8x1xf32> to vector<8x128xf32>
    %23 = arith.subf %6, %22 : vector<8x128xf32>
    %cst_14 = arith.constant 9.99999974E-6 : f32
    %24 = vector.broadcast %cst_14 : f32 to vector<8x1xf32>
    %25 = arith.addf %21, %24 : vector<8x1xf32>
    %26 = math.rsqrt %25 : vector<8x1xf32>
    %27 = vector.broadcast %26 : vector<8x1xf32> to vector<8x128xf32>
    %28 = arith.mulf %23, %27 : vector<8x128xf32>
    %29 = vector.broadcast %7 : vector<1x128xf32> to vector<8x128xf32>
    %30 = arith.mulf %28, %29 : vector<8x128xf32>
    %31 = vector.broadcast %8 : vector<1x128xf32> to vector<8x128xf32>
    %32 = arith.addf %30, %31 : vector<8x128xf32>
    %cst_15 = arith.constant 0.000000e+00 : f32
    %33 = vector.broadcast %cst_15 : f32 to vector<8x128xf32>
    %34 = arith.maximumf %32, %33 : vector<8x128xf32>
    %35 = arith.truncf %34 : vector<8x128xf32> to vector<8x128xbf16>
    %c0_16 = arith.constant 0 : index
    %c0_17 = arith.constant 0 : index
    %36 = vector.load %arg6[%c0_16, %c0_17] : memref<128x128xbf16, #tpu.memory_space<vmem>>, vector<128x128xbf16>
    %cst_18 = arith.constant dense<0.000000e+00> : vector<8x128xf32>
    %37 = tpu.matmul %35, %36, %cst_18 {dimension_numbers = #tpu.dot_dimension_numbers<[1], [0], [0], [1], [0, 0, 1, 1], [], []>} : vector<8x128xbf16>, vector<128x128xbf16>, vector<8x128xf32> -> vector<8x128xf32>
    %c0_19 = arith.constant 0 : index
    %c0_20 = arith.constant 0 : index
    %38 = vector.load %arg7[%c0_19, %c0_20] : memref<1x128xf32, #tpu.memory_space<vmem>>, vector<1x128xf32>
    %39 = vector.broadcast %38 : vector<1x128xf32> to vector<8x128xf32>
    %40 = arith.addf %37, %39 : vector<8x128xf32>
    %c0_21 = arith.constant 0 : index
    %c0_22 = arith.constant 0 : index
    %41 = vector.load %arg8[%c0_21, %c0_22] : memref<1x128xf32, #tpu.memory_space<vmem>>, vector<1x128xf32>
    %c0_23 = arith.constant 0 : index
    %c0_24 = arith.constant 0 : index
    %42 = vector.load %arg9[%c0_23, %c0_24] : memref<1x128xf32, #tpu.memory_space<vmem>>, vector<1x128xf32>
    %cst_25 = arith.constant dense<0.000000e+00> : vector<8xf32>
    %43 = vector.multi_reduction <add>, %40, %cst_25 [1] : vector<8x128xf32> to vector<8xf32>
    %44 = vector.shape_cast %43 : vector<8xf32> to vector<8x1xf32>
    %cst_26 = arith.constant 1.280000e+02 : f32
    %45 = vector.broadcast %cst_26 : f32 to vector<8x1xf32>
    %46 = arith.divf %44, %45 : vector<8x1xf32>
    %47 = arith.mulf %40, %40 : vector<8x128xf32>
    %cst_27 = arith.constant dense<0.000000e+00> : vector<8xf32>
    %48 = vector.multi_reduction <add>, %47, %cst_27 [1] : vector<8x128xf32> to vector<8xf32>
    %49 = vector.shape_cast %48 : vector<8xf32> to vector<8x1xf32>
    %cst_28 = arith.constant 1.280000e+02 : f32
    %50 = vector.broadcast %cst_28 : f32 to vector<8x1xf32>
    %51 = arith.divf %49, %50 : vector<8x1xf32>
    %52 = arith.mulf %46, %46 : vector<8x1xf32>
    %53 = arith.subf %51, %52 : vector<8x1xf32>
    %cst_29 = arith.constant 0.000000e+00 : f32
    %54 = vector.broadcast %cst_29 : f32 to vector<8x1xf32>
    %55 = arith.maximumf %53, %54 : vector<8x1xf32>
    %56 = vector.broadcast %46 : vector<8x1xf32> to vector<8x128xf32>
    %57 = arith.subf %40, %56 : vector<8x128xf32>
    %cst_30 = arith.constant 9.99999974E-6 : f32
    %58 = vector.broadcast %cst_30 : f32 to vector<8x1xf32>
    %59 = arith.addf %55, %58 : vector<8x1xf32>
    %60 = math.rsqrt %59 : vector<8x1xf32>
    %61 = vector.broadcast %60 : vector<8x1xf32> to vector<8x128xf32>
    %62 = arith.mulf %57, %61 : vector<8x128xf32>
    %63 = vector.broadcast %41 : vector<1x128xf32> to vector<8x128xf32>
    %64 = arith.mulf %62, %63 : vector<8x128xf32>
    %65 = vector.broadcast %42 : vector<1x128xf32> to vector<8x128xf32>
    %66 = arith.addf %64, %65 : vector<8x128xf32>
    %cst_31 = arith.constant 0.000000e+00 : f32
    %67 = vector.broadcast %cst_31 : f32 to vector<8x128xf32>
    %68 = arith.maximumf %66, %67 : vector<8x128xf32>
    %69 = arith.truncf %68 : vector<8x128xf32> to vector<8x128xbf16>
    %c0_32 = arith.constant 0 : index
    %c0_33 = arith.constant 0 : index
    %70 = vector.load %arg10[%c0_32, %c0_33] : memref<128x64xbf16, #tpu.memory_space<vmem>>, vector<128x64xbf16>
    %cst_34 = arith.constant dense<0.000000e+00> : vector<8x64xf32>
    %71 = tpu.matmul %69, %70, %cst_34 {dimension_numbers = #tpu.dot_dimension_numbers<[1], [0], [0], [1], [0, 0, 1, 1], [], []>} : vector<8x128xbf16>, vector<128x64xbf16>, vector<8x64xf32> -> vector<8x64xf32>
    %c0_35 = arith.constant 0 : index
    %c0_36 = arith.constant 0 : index
    %72 = vector.load %arg11[%c0_35, %c0_36] : memref<1x64xf32, #tpu.memory_space<vmem>>, vector<1x64xf32>
    %73 = vector.broadcast %72 : vector<1x64xf32> to vector<8x64xf32>
    %74 = arith.addf %71, %73 : vector<8x64xf32>
    %cst_37 = arith.constant 0.000000e+00 : f32
    %75 = vector.broadcast %cst_37 : f32 to vector<8x64xf32>
    %76 = arith.maximumf %74, %75 : vector<8x64xf32>
    %77 = arith.truncf %76 : vector<8x64xf32> to vector<8x64xbf16>
    %c0_38 = arith.constant 0 : index
    %c0_39 = arith.constant 0 : index
    %78 = vector.load %arg12[%c0_38, %c0_39] : memref<64x128xbf16, #tpu.memory_space<vmem>>, vector<64x128xbf16>
    %cst_40 = arith.constant dense<0.000000e+00> : vector<8x128xf32>
    %79 = tpu.matmul %77, %78, %cst_40 {dimension_numbers = #tpu.dot_dimension_numbers<[1], [0], [0], [1], [0, 0, 1, 1], [], []>} : vector<8x64xbf16>, vector<64x128xbf16>, vector<8x128xf32> -> vector<8x128xf32>
    %c0_41 = arith.constant 0 : index
    %c0_42 = arith.constant 0 : index
    %80 = vector.load %arg13[%c0_41, %c0_42] : memref<1x128xf32, #tpu.memory_space<vmem>>, vector<1x128xf32>
    %81 = vector.broadcast %80 : vector<1x128xf32> to vector<8x128xf32>
    %82 = arith.addf %79, %81 : vector<8x128xf32>
    %c0_43 = arith.constant 0 : index
    %c0_44 = arith.constant 0 : index
    %83 = vector.load %arg14[%c0_43, %c0_44] : memref<8x128xf32, #tpu.memory_space<vmem>>, vector<8x128xf32>
    tpu.vector_store %arg14[%c0_43, %c0_44], %82 {strides = array<i32>} : memref<8x128xf32, #tpu.memory_space<vmem>>, vector<8x128xf32>,
    return
  }
  func.func @transform_0(%arg0: i32) -> (i32, i32) {
    %c0_i32 = arith.constant 0 : i32
    %c0_i32_0 = arith.constant 0 : i32
    return %arg0, %c0_i32 : i32, i32
  }
  func.func @transform_1(%arg0: i32) -> (i32, i32) {
    %c0_i32 = arith.constant 0 : i32
    %c0_i32_0 = arith.constant 0 : i32
    %c0_i32_1 = arith.constant 0 : i32
    return %c0_i32, %c0_i32_0 : i32, i32
  }
  func.func @transform_2(%arg0: i32) -> (i32, i32) {
    %c0_i32 = arith.constant 0 : i32
    %c0_i32_0 = arith.constant 0 : i32
    %c0_i32_1 = arith.constant 0 : i32
    return %c0_i32, %c0_i32_0 : i32, i32
  }
  func.func @transform_3(%arg0: i32) -> (i32, i32) {
    %c0_i32 = arith.constant 0 : i32
    %c0_i32_0 = arith.constant 0 : i32
    %c0_i32_1 = arith.constant 0 : i32
    return %c0_i32, %c0_i32_0 : i32, i32
  }
  func.func @transform_4(%arg0: i32) -> (i32, i32) {
    %c0_i32 = arith.constant 0 : i32
    %c0_i32_0 = arith.constant 0 : i32
    %c0_i32_1 = arith.constant 0 : i32
    return %c0_i32, %c0_i32_0 : i32, i32
  }
  func.func @transform_5(%arg0: i32) -> (i32, i32) {
    %c0_i32 = arith.constant 0 : i32
    %c0_i32_0 = arith.constant 0 : i32
    %c0_i32_1 = arith.constant 0 : i32
    return %c0_i32, %c0_i32_0 : i32, i32
  }
  func.func @transform_6(%arg0: i32) -> (i32, i32) {
    %c0_i32 = arith.constant 0 : i32
    %c0_i32_0 = arith.constant 0 : i32
    %c0_i32_1 = arith.constant 0 : i32
    return %c0_i32, %c0_i32_0 : i32, i32
  }
  func.func @transform_7(%arg0: i32) -> (i32, i32) {
    %c0_i32 = arith.constant 0 : i32
    %c0_i32_0 = arith.constant 0 : i32
    %c0_i32_1 = arith.constant 0 : i32
    return %c0_i32, %c0_i32_0 : i32, i32
  }
  func.func @transform_8(%arg0: i32) -> (i32, i32) {
    %c0_i32 = arith.constant 0 : i32
    %c0_i32_0 = arith.constant 0 : i32
    %c0_i32_1 = arith.constant 0 : i32
    return %c0_i32, %c0_i32_0 : i32, i32
  }
  func.func @transform_9(%arg0: i32) -> (i32, i32) {
    %c0_i32 = arith.constant 0 : i32
    %c0_i32_0 = arith.constant 0 : i32
    %c0_i32_1 = arith.constant 0 : i32
    return %c0_i32, %c0_i32_0 : i32, i32
  }
  func.func @transform_10(%arg0: i32) -> (i32, i32) {
    %c0_i32 = arith.constant 0 : i32
    %c0_i32_0 = arith.constant 0 : i32
    %c0_i32_1 = arith.constant 0 : i32
    return %c0_i32, %c0_i32_0 : i32, i32
  }
  func.func @transform_11(%arg0: i32) -> (i32, i32) {
    %c0_i32 = arith.constant 0 : i32
    %c0_i32_0 = arith.constant 0 : i32
    %c0_i32_1 = arith.constant 0 : i32
    return %c0_i32, %c0_i32_0 : i32, i32
  }
  func.func @transform_12(%arg0: i32) -> (i32, i32) {
    %c0_i32 = arith.constant 0 : i32
    %c0_i32_0 = arith.constant 0 : i32
    %c0_i32_1 = arith.constant 0 : i32
    return %c0_i32, %c0_i32_0 : i32, i32
  }
  func.func @transform_13(%arg0: i32) -> (i32, i32) {
    %c0_i32 = arith.constant 0 : i32
    %c0_i32_0 = arith.constant 0 : i32
    return %arg0, %c0_i32 : i32, i32
  }
}

</mosaic_0001>

<bundles_post_ra>
// kernel: ddqn_forward.1
= control target key start
LH: loop header
LB: loop body
LE: loop exit
PB: predicated region body
PF: predicated region fallthrough
CT: control target
= control target key end

     0   :  { %vm57_vm0 = vcmask 1043456   ;;  %vm53_vm1 = vcmask 64512   ;;  %s694_s0 = inlined_call_operand.vmem [shape: f32[8,8], index: 0, kind: input, shape index: {}]   ;;  %s695_s1 = inlined_call_operand.vmem [shape: bf16[8,128], index: 1, kind: input, shape index: {}]   ;;  %s696_s2 = inlined_call_operand.vmem [shape: f32[1,128], index: 2, kind: input, shape index: {}]   ;;  %s697_s3 = inlined_call_operand.vmem [shape: f32[1,128], index: 3, kind: input, shape index: {}]   ;;  %s698_s4 = inlined_call_operand.vmem [shape: f32[1,128], index: 4, kind: input, shape index: {}]   ;;  %s699_s5 = inlined_call_operand.vmem [shape: bf16[128,128], index: 5, kind: input, shape index: {}]   ;;  %s700_s6 = inlined_call_operand.vmem [shape: f32[1,128], index: 6, kind: input, shape index: {}]   ;;  %s701_s7 = inlined_call_operand.vmem [shape: f32[1,128], index: 7, kind: input, shape index: {}]   ;;  %s702_s8 = inlined_call_operand.vmem [shape: f32[1,128], index: 8, kind: input, shape index: {}]   ;;  %s703_s9 = inlined_call_operand.vmem [shape: bf16[128,64], index: 9, kind: input, shape index: {}]   ;;  %s704_s10 = inlined_call_operand.vmem [shape: f32[1,64], index: 10, kind: input, shape index: {}]   ;;  %s705_s11 = inlined_call_operand.vmem [shape: bf16[64,128], index: 11, kind: input, shape index: {}]   ;;  %s706_s12 = inlined_call_operand.vmem [shape: f32[1,128], index: 12, kind: input, shape index: {}]   ;;  %s707_s13 = inlined_call_operand.hbm [shape: f32[8,128], index: 13, kind: output, shape index: {}]  }
   0x1   :  { %v48_v0 = vld [vmem:[%s695_s1] sm:$0xf] }
   0x2   :  { %v46_v1 = vld [vmem:[%s694_s0] sm:$0xff]  ;;  %v59_v2 = vsel %vm57_vm0, %v48_v0, 0 }
   0x3   :  { %v47_v3 = vpack.c.bf16 %v46_v1, %v46_v1  ;;  %68 = vmatpush.bf16.msra.mxu0 %v59_v2 }
   0x4   :  { %18 = vsyncpa [#allocation3], 0  ;;  %v489_v4 = vld [vmem:[%s696_s2] ss:$0 sm:$0xff]  ;;  %v529_v9 = vmov 128.0   ;;  %v474_v10 = vld [vmem:[%s699_s5 + $0x38] sm:$0xff] }
   0x5   :  { %497 = vrcp.f32 %v529_v9  ;;  %184 = vmatpush.bf16.msra.mxu1 %v474_v10  ;;  %v473_v12 = vld [vmem:[%s699_s5 + $0x30] sm:$0xff]  ;;  %v472_v14 = vld [vmem:[%s699_s5 + $0x28] sm:$0xff]  ;;  %v471_v16 = vld [vmem:[%s699_s5 + $0x20] sm:$0xff]  ;;  %vm351_vm9 = vcmask 523264   ;;  %s530_s2 = smov [#allocation2]   ;;  %s376_s17 = sshll.u32 %s707_s13, 4  ;;  %s377_s17 = int_to_ptr.hbm [resolvable:$true] %s376_s17 }
   0x6   :  { %385 = vmatmul.msk.bf16.vlgmr.msra.gmra.mxu0 %vm53_vm1, %v47_v3  ;;  %v470_v18 = vld [vmem:[%s699_s5 + $0x18] sm:$0xff]  ;;  %v469_v20 = vld [vmem:[%s699_s5 + $0x10] sm:$0xff]  ;;  %v468_v23 = vld [vmem:[%s699_s5 + $0x8] sm:$0xff] }
   0x7   :  { %v467_v25 = vld [vmem:[%s699_s5] sm:$0xff]  ;;  %v482_v52 = vld [vmem:[%s703_s9 + $0x38] sm:$0xff]  ;;  %v481_v53 = vld [vmem:[%s703_s9 + $0x30] sm:$0xff] }
   0x8   :  { %v490_v39 = vld [vmem:[%s697_s3] ss:$0 sm:$0xff]  ;;  %300 = vmatpush.bf16.msra.mxu2 %v482_v52  ;;  %v480_v54 = vld [vmem:[%s703_s9 + $0x28] sm:$0xff]  ;;  %v478_v56 = vld [vmem:[%s703_s9 + $0x18] sm:$0xff] }
   0x9   :  { %185 = vmatpush.bf16.msra.mxu1 %v473_v12  ;;  %v491_v42 = vld [vmem:[%s698_s4] ss:$0 sm:$0xff]  ;;  %v477_v57 = vld [vmem:[%s703_s9 + $0x10] sm:$0xff]  ;;  %v476_v59 = vld [vmem:[%s703_s9 + $0x8] sm:$0xff] }
   0xa   :  { %v492_v47 = vld [vmem:[%s700_s6] ss:$0 sm:$0xff]  ;;  %v486_v3 = vld [vmem:[%s705_s11 + $0x18] sm:$0xff]  ;;  %s374_s6 = sshll.u32 %s530_s2, 4  ;;  %s375_s6 = int_to_ptr.vmem [resolvable:$true] %s374_s6 }
   0xb   :  { %v498_v11 = vpop.eup %497  ;;  %v479_v55 = vld [vmem:[%s703_s9 + $0x20] sm:$0xff]  ;;  %359 = vmatpush.bf16.msra.mxu3 %v486_v3 }
   0xc   :  { %v79_v13 = vmul.f32 128.0, %v498_v11  ;;  %vm83_vm2 = vweird.f32 %v498_v11  ;;  %301 = vmatpush.bf16.msra.mxu2 %v481_v53  ;;  %v475_v61 = vld [vmem:[%s703_s9] sm:$0xff] }
   0xd   :  { %186 = vmatpush.bf16.msra.mxu1 %v472_v14 }
   0xe   :  { %v80_v15 = vsub.f32 1.0, %v79_v13  ;;  %v493_v13 = vld [vmem:[%s701_s7] ss:$0 sm:$0xff] }
  0x10   :  { %v81_v17 = vmul.f32 %v498_v11, %v80_v15  ;;  %302 = vmatpush.bf16.msra.mxu2 %v480_v54 }
  0x11   :  { %187 = vmatpush.bf16.msra.mxu1 %v471_v16  ;;  %v494_v16 = vld [vmem:[%s702_s8] ss:$0 sm:$0xff] }
  0x12   :  { %v82_v19 = vadd.f32 %v498_v11, %v81_v17 }
  0x14   :  { %v84_v22 = vsel %vm83_vm2, %v498_v11, %v82_v19  ;;  %303 = vmatpush.bf16.msra.mxu2 %v479_v55 }
  0x15   :  { %188 = vmatpush.bf16.msra.mxu1 %v470_v18 }
  0x18   :  { %304 = vmatpush.bf16.msra.mxu2 %v478_v56 }
  0x19   :  { %189 = vmatpush.bf16.msra.mxu1 %v469_v20 }
  0x1c   :  { %305 = vmatpush.bf16.msra.mxu2 %v477_v57 }
  0x1d   :  { %190 = vmatpush.bf16.msra.mxu1 %v468_v23  ;;  %v495_v23 = vld [vmem:[%s704_s10] ss:$0 sm:$0xff] }
  0x20   :  { %306 = vmatpush.bf16.msra.mxu2 %v476_v59 }
  0x21   :  { %191 = vmatpush.bf16.msra.mxu1 %v467_v25 }
  0x24   :  { %307 = vmatpush.bf16.msra.mxu2 %v475_v61 }
  0x83   :  { %v70_v5 = vpop.f32.mrf.mxu0 }
  0x84   :  { %v71_v6 = vadd.f32 %v489_v4, %v70_v5  ;;  %v485_v5 = vld [vmem:[%s705_s11 + $0x10] sm:$0xff] }
  0x85   :  { %360 = vmatpush.bf16.msra.mxu3 %v485_v5 }
  0x86   :  { %76 = vadd.xlane.f32.xlu0 %v71_v6  ;;  %v86_v8 = vmul.f32 %v71_v6, %v71_v6 }
  0x8b   :  { %v72_v7 = vpop.f32.mrf.mxu0 }
  0x8e   :  { %87 = vadd.xlane.f32.xlu0 %v86_v8 }
  0xf9   :  { %v77_v21 = vpop.xlane.xlu0 %76 }
  0xfa   :  { %v85_v24 = vmul.f32 %v84_v22, %v77_v21  ;;  %v484_v21 = vld [vmem:[%s705_s11 + $0x8] sm:$0xff] }
  0xfb   :  { %361 = vmatpush.bf16.msra.mxu3 %v484_v21 }
  0xfc   :  { %v90_v27 = vmul.f32 %v85_v24, %v85_v24  ;;  %v93_v38 = vsub.f32 %v71_v6, %v85_v24 }
 0x101   :  { %v88_v26 = vpop.xlane.xlu0 %87 }
 0x102   :  { %v89_v28 = vmul.f32 %v88_v26, %v84_v22 }
 0x104   :  { %v91_v29 = vsub.f32 %v89_v28, %v90_v27 }
 0x106   :  { %v92_v30 = vmax.f32 %v91_v29, 0.0  ;;  %v496_v29 = vld [vmem:[%s706_s12] ss:$0 sm:$0xff] }
 0x108   :  { %v94_v31 = vadd.f32 1e-05, %v92_v30 }
 0x10a   :  { %499 = vrsqrt.f32 %v94_v31  ;;  %vm101_vm4 = vweird.f32 %v94_v31 }
 0x110   :  { %v500_v32 = vpop.eup %499 }
 0x111   :  { %v96_v33 = vmul.f32 %v500_v32, %v94_v31  ;;  %vm102_vm3 = vweird.f32 %v500_v32 }
 0x112   :  { %vm103_vm5 = vmor %vm101_vm4, %vm102_vm3 }
 0x113   :  { %v97_v34 = vmul.f32 %v500_v32, %v96_v33 }
 0x115   :  { %v98_v35 = vmul.f32 0.5, %v97_v34 }
 0x117   :  { %v99_v36 = vsub.f32 1.5, %v98_v35 }
 0x119   :  { %v100_v37 = vmul.f32 %v500_v32, %v99_v36 }
 0x11b   :  { %v104_v40 = vsel %vm103_vm5, %v500_v32, %v100_v37 }
 0x11c   :  { %v105_v41 = vmul.f32 %v104_v40, %v93_v38 }
 0x11e   :  { %v109_v43 = vmul.f32 %v490_v39, %v105_v41 }
 0x120   :  { %v113_v44 = vadd.f32 %v491_v42, %v109_v43 }
 0x122   :  { %v114_v45 = vmax.f32 %v113_v44, 0.0 }
 0x124   :  { %v115_v46 = vpack.c.bf16 %v114_v45, %v114_v45 }
 0x126   :  { %192 = vmatmul.bf16.vlgmr.msra.gmra.mxu1 %v115_v46 }
 0x1a3   :  { %v193_v48 = vpop.f32.mrf.mxu1 }
 0x1a4   :  { %v194_v49 = vadd.f32 %v492_v47, %v193_v48 }
 0x1a6   :  { %199 = vadd.xlane.f32.xlu1 %v194_v49  ;;  %v202_v51 = vmul.f32 %v194_v49, %v194_v49 }
 0x1ab   :  { %v195_v50 = vpop.f32.mrf.mxu1 }
 0x1ae   :  { %203 = vadd.xlane.f32.xlu1 %v202_v51 }
 0x219   :  { %v200_v58 = vpop.xlane.xlu1 %199 }
 0x21a   :  { %v201_v60 = vmul.f32 %v200_v58, %v84_v22 }
 0x21c   :  { %v206_v63 = vmul.f32 %v201_v60, %v201_v60  ;;  %v209_v12 = vsub.f32 %v194_v49, %v201_v60 }
 0x221   :  { %v204_v62 = vpop.xlane.xlu1 %203 }
 0x222   :  { %v205_v0 = vmul.f32 %v204_v62, %v84_v22  ;;  %v483_v22 = vld [vmem:[%s705_s11] sm:$0xff] }
 0x223   :  { %362 = vmatpush.bf16.msra.mxu3 %v483_v22 }
 0x224   :  { %v207_v1 = vsub.f32 %v205_v0, %v206_v63 }
 0x226   :  { %v208_v2 = vmax.f32 %v207_v1, 0.0 }
 0x228   :  { %v210_v4 = vadd.f32 1e-05, %v208_v2 }
 0x22a   :  { %501 = vrsqrt.f32 %v210_v4  ;;  %vm217_vm7 = vweird.f32 %v210_v4 }
 0x230   :  { %v502_v6 = vpop.eup %501 }
 0x231   :  { %v212_v7 = vmul.f32 %v502_v6, %v210_v4  ;;  %vm218_vm6 = vweird.f32 %v502_v6 }
 0x232   :  { %vm219_vm8 = vmor %vm217_vm7, %vm218_vm6 }
 0x233   :  { %v213_v8 = vmul.f32 %v502_v6, %v212_v7 }
 0x235   :  { %v214_v9 = vmul.f32 0.5, %v213_v8 }
 0x237   :  { %v215_v10 = vsub.f32 1.5, %v214_v9 }
 0x239   :  { %v216_v11 = vmul.f32 %v502_v6, %v215_v10 }
 0x23b   :  { %v220_v14 = vsel %vm219_vm8, %v502_v6, %v216_v11 }
 0x23c   :  { %v221_v15 = vmul.f32 %v220_v14, %v209_v12 }
 0x23e   :  { %v225_v17 = vmul.f32 %v493_v13, %v221_v15 }
 0x240   :  { %v229_v18 = vadd.f32 %v494_v16, %v225_v17 }
 0x242   :  { %v230_v19 = vmax.f32 %v229_v18, 0.0 }
 0x244   :  { %v231_v20 = vpack.c.bf16 %v230_v19, %v230_v19 }
 0x246   :  { %308 = vmatmul.bf16.vlgmr.msra.gmra.mxu2 %v231_v20 }
 0x2c9   :  { %v309_v24 = vpop.f32.mrf.mxu2 }
 0x2ca   :  { %v310_v25 = vadd.f32 %v495_v23, %v309_v24 }
 0x2cc   :  { %v313_v26 = vmax.f32 %v310_v25, 0.0 }
 0x2ce   :  { %v314_v27 = vpack.c.bf16 %v313_v26, %v313_v26 }
 0x2d0   :  { %466 = vmatmul.msk.bf16.vlgmr.msra.gmra.mxu3 %vm351_vm9, %v314_v27 }
 0x2d1   :  { %v311_v28 = vpop.f32.mrf.mxu2 }
 0x353   :  { %v364_v30 = vpop.f32.mrf.mxu3 }
 0x354   :  { %v365_v31 = vadd.f32 %v496_v29, %v364_v30 }
 0x356   :  { %368 = vst [vmem:[#allocation2] sm:$0xff] %v365_v31 }
 0x357   :  { %379 = dma.vmem_to_hbm [thread:$0]  %s375_s6, 128, %s377_s17, [#allocation3]  }
 0x35b   :  { %v366_v32 = vpop.f32.mrf.mxu3 }
 0x35c   :  { %527 = dma.done.wait [#allocation3], 128  }
 0x35d   :  { %528 = vsyncadd [#allocation3], 4294967168 }
 0x35e   :  { %384 = vsyncpa [#allocation3], 1 }

</bundles_post_ra>
